<compile_context>
chip_gen: v6e
topology: v6e:2x2x1
jax: 0.10.0
libtpu: 0.0.40
codegen_flags: <defaults>
</compile_context>

<pallas_src>
import math

import jax
import jax.numpy as jnp
from jax.experimental import pallas as pl
from jax.experimental.pallas import tpu as pltpu

_LANE = 128


def _dp_calibrator_kernel(alpha_ref, beta_ref, x_ref, o_ref):
    # alpha_ref: (1,) f32 scalar-prefetch value in SMEM
    # beta_ref:  (1, tn) f32 row (broadcast over rows)
    # x_ref/o_ref: (tm, tn) tiles
    alpha = alpha_ref[0]
    o_ref[...] = (alpha * x_ref[...] + beta_ref[...]).astype(o_ref.dtype)


def _default_budgets():
    """(tile_bytes, vmem_limit_bytes) chosen per TPU generation."""
    kind = ""
    try:
        kind = jax.devices()[0].device_kind.lower()
    except Exception:
        pass
    if "7" in kind:                      # v7x: 64 MiB VMEM per TensorCore
        return 6 << 20, 40 << 20
    return 8 << 20, 64 << 20             # v5e / v6e: 128 MiB physical VMEM


def _choose_lane_tile(W, max_lane_tile):
    """Widest sensible lane tile for a W that is a multiple of 128."""
    if W <= max_lane_tile:
        return W
    cap = max_lane_tile - (max_lane_tile % _LANE)
    best = _LANE
    for cand in range(cap, _LANE - 1, -_LANE):
        if W % cand == 0:
            best = cand
            break
    if best >= 512:
        return best
    # No decent multiple-of-128 divisor (e.g. W = 128 * prime): keep tiles wide
    # and let Pallas mask the single boundary column block instead.
    return cap


def _choose_row_tile(R, lane_width, itemsize, tile_bytes, sub):
    """Row tile from the byte budget; prefer >= 2 row blocks when possible."""
    target = max(sub, (tile_bytes // max(1, lane_width * itemsize)) // sub * sub)
    if target < R:
        return target
    # Everything fits in one tile: split into >= 2 row blocks so both v7x
    # TensorCores get work and the DMA pipeline has more than one step.
    if R >= 2 * sub:
        half = -(-R // 2)
        return -(-half // sub) * sub
    if R > sub:
        return sub
    return R                              # tiny input: single full-extent block


def dp_calibrator_forward(x, alpha, beta, *,
                          max_lane_tile=2048,
                          tile_bytes=None,
                          vmem_limit_bytes=None,
                          out_dtype=None):
    """Pallas TPU implementation of DPCalibrator.forward.

    x:     (N, C) logprobs/logits
    alpha: scalar parameter
    beta:  (C,)  parameter
    returns (N, C) = alpha * x + beta   (dtype = out_dtype or x.dtype)
    """
    N, C = x.shape
    in_dtype = jnp.dtype(x.dtype)
    out_dtype = jnp.dtype(x.dtype if out_dtype is None else out_dtype)

    if tile_bytes is None or vmem_limit_bytes is None:
        d_tile, d_vmem = _default_budgets()
        tile_bytes = d_tile if tile_bytes is None else tile_bytes
        vmem_limit_bytes = d_vmem if vmem_limit_bytes is None else vmem_limit_bytes

    beta32 = jnp.asarray(beta, jnp.float32)
    alpha_arr = jnp.asarray(alpha, jnp.float32).reshape(1)

    # ---- lane-dense packing (pure metadata reshape; no HBM copy) ----
    k = _LANE // math.gcd(C, _LANE)        # rows packed per slab row
    if N % k == 0:
        W, R = C * k, N // k
        x_in = x.reshape(R, W) if k > 1 else x
        beta_row = (jnp.tile(beta32, (k,)) if k > 1 else beta32).reshape(1, W)
        packed = k > 1
        tn = _choose_lane_tile(W, max_lane_tile)
    else:
        # Ragged batch: skip packing entirely (no pad copy, no slice-back).
        # A block whose last dim equals the full C is legal even if C % 128 != 0.
        W, R = C, N
        x_in = x
        beta_row = beta32.reshape(1, C)
        packed = False
        tn = C

    itemsize = max(in_dtype.itemsize, out_dtype.itemsize)
    sub = max(8, 32 // min(in_dtype.itemsize, out_dtype.itemsize))
    tm = _choose_row_tile(R, tn, itemsize, tile_bytes, sub)

    # Non-dividing tiles are fine: boundary blocks are masked by Pallas.
    n_col = pl.cdiv(W, tn)
    n_row = pl.cdiv(R, tm)

    cost = pl.CostEstimate(
        flops=2 * N * C,
        transcendentals=0,
        bytes_accessed=N * C * (in_dtype.itemsize + out_dtype.itemsize) + C * 4 + 4,
    )

    out = pl.pallas_call(
        _dp_calibrator_kernel,
        out_shape=jax.ShapeDtypeStruct((R, W), out_dtype),
        grid_spec=pltpu.PrefetchScalarGridSpec(
            num_scalar_prefetch=1,             # alpha lives in SMEM
            grid=(n_col, n_row),               # columns outer: beta block reused
            in_specs=[
                pl.BlockSpec((1, tn), lambda j, i, a: (0, j)),    # beta row
                pl.BlockSpec((tm, tn), lambda j, i, a: (i, j)),   # x tile
            ],
            out_specs=pl.BlockSpec((tm, tn), lambda j, i, a: (i, j)),
        ),
        compiler_params=pltpu.CompilerParams(
            dimension_semantics=("parallel", "parallel"),
            vmem_limit_bytes=vmem_limit_bytes,
        ),
        cost_estimate=cost,
    )(alpha_arr, beta_row, x_in)

    return out.reshape(N, C) if packed else out


if __name__ == "__main__":
    key = jax.random.PRNGKey(0)
    k1, k2, k3, k4 = jax.random.split(key, 4)

    # --- Case 1: C < 128, N divisible by pack factor (lane-dense path) ---
    N1, C1 = 8, 32
    x1 = jax.random.normal(k1, (N1, C1), dtype=jnp.float32)
    alpha1 = jnp.float32(1.5)
    beta1 = 0.01 * jnp.arange(C1, dtype=jnp.float32)
    out1 = jax.block_until_ready(dp_calibrator_forward(x1, alpha1, beta1))
    ref1 = alpha1 * x1 + beta1[None, :]
    assert out1.shape == (N1, C1)
    assert jnp.allclose(out1, ref1, atol=1e-6, rtol=1e-6)

    # --- Case 2: ragged batch (N % pack != 0) -> unpacked, zero-copy path ---
    N2, C2 = 10, 32
    x2 = jax.random.normal(k2, (N2, C2), dtype=jnp.float32)
    alpha2 = jnp.float32(0.75)
    beta2 = 0.05 * jnp.arange(C2, dtype=jnp.float32) - 0.1
    out2 = jax.block_until_ready(dp_calibrator_forward(x2, alpha2, beta2))
    ref2 = alpha2 * x2 + beta2[None, :]
    assert out2.shape == (N2, C2)
    assert jnp.allclose(out2, ref2, atol=1e-6, rtol=1e-6)

    # --- Case 3: C multiple of 128, forced multi-block 2-D grid ---
    N3, C3 = 32, 256
    x3 = jax.random.normal(k3, (N3, C3), dtype=jnp.float32)
    alpha3 = jnp.float32(1.25)
    beta3 = 0.01 * jnp.arange(C3, dtype=jnp.float32)
    out3 = jax.block_until_ready(
        dp_calibrator_forward(x3, alpha3, beta3,
                              max_lane_tile=128, tile_bytes=8 * 128 * 4))
    ref3 = alpha3 * x3 + beta3[None, :]
    assert out3.shape == (N3, C3)
    assert jnp.allclose(out3, ref3, atol=1e-6, rtol=1e-6)

    # --- Case 4: bf16 input exercises the dtype-aware tile math ---
    N4, C4 = 16, 32
    x4 = jax.random.normal(k4, (N4, C4), dtype=jnp.float32).astype(jnp.bfloat16)
    alpha4 = jnp.float32(0.5)
    beta4 = 0.02 * jnp.arange(C4, dtype=jnp.float32)
    out4 = jax.block_until_ready(dp_calibrator_forward(x4, alpha4, beta4))
    ref4 = (alpha4 * x4.astype(jnp.float32) + beta4[None, :]).astype(jnp.bfloat16)
    assert out4.shape == (N4, C4)
    assert jnp.allclose(out4.astype(jnp.float32), ref4.astype(jnp.float32),
                        atol=1e-2, rtol=1e-2)

    # TODO(synk): fit() (LBFGS loop) and calibrate() (log_softmax wrapper) are
    # host-side training/eval glue; only the forward hot path is kernelized.
    print("KERNEL_OK")
</pallas_src>

<mosaic_0001>
module attributes {stable_mosaic.version = 11 : i64} {
  func.func @_dp_calibrator_kernel(%arg0: i32, %arg1: i32, %arg2: memref<1xf32, #tpu.memory_space<smem>>, %arg3: memref<1x128xf32, #tpu.memory_space<vmem>>, %arg4: memref<2x128xf32, #tpu.memory_space<vmem>>, %arg5: memref<2x128xf32, #tpu.memory_space<vmem>>) attributes {dimension_semantics = [#tpu.dimension_semantics<parallel>, #tpu.dimension_semantics<parallel>], iteration_bounds = array<i64: 1, 1>, scalar_prefetch = 1 : i64, scratch_operands = 0 : i64, tpu.core_type = #tpu.core_type<tc>, window_params = [{transform_indices = @transform_0, window_bounds = array<i64: 1, 128>}, {transform_indices = @transform_1, window_bounds = array<i64: 2, 128>}, {transform_indices = @transform_2, window_bounds = array<i64: 2, 128>}]} {
    %c0 = arith.constant 0 : index
    %0 = memref.load %arg2[%c0] : memref<1xf32, #tpu.memory_space<smem>>
    %c0_0 = arith.constant 0 : index
    %c0_1 = arith.constant 0 : index
    %1 = vector.load %arg4[%c0_0, %c0_1] : memref<2x128xf32, #tpu.memory_space<vmem>>, vector<2x128xf32>
    %2 = vector.broadcast %0 : f32 to vector<2x128xf32>
    %3 = arith.mulf %2, %1 : vector<2x128xf32>
    %c0_2 = arith.constant 0 : index
    %c0_3 = arith.constant 0 : index
    %4 = vector.load %arg3[%c0_2, %c0_3] : memref<1x128xf32, #tpu.memory_space<vmem>>, vector<1x128xf32>
    %5 = vector.broadcast %4 : vector<1x128xf32> to vector<2x128xf32>
    %6 = arith.addf %3, %5 : vector<2x128xf32>
    %c0_4 = arith.constant 0 : index
    %c0_5 = arith.constant 0 : index
    %7 = vector.load %arg5[%c0_4, %c0_5] : memref<2x128xf32, #tpu.memory_space<vmem>>, vector<2x128xf32>
    tpu.vector_store %arg5[%c0_4, %c0_5], %6 {strides = array<i32>} : memref<2x128xf32, #tpu.memory_space<vmem>>, vector<2x128xf32>,
    return
  }
  func.func @transform_0(%arg0: i32, %arg1: i32, %arg2: memref<1xf32, #tpu.memory_space<smem>>) -> (i32, i32) {
    %c0_i32 = arith.constant 0 : i32
    %c0_i32_0 = arith.constant 0 : i32
    return %c0_i32, %arg0 : i32, i32
  }
  func.func @transform_1(%arg0: i32, %arg1: i32, %arg2: memref<1xf32, #tpu.memory_space<smem>>) -> (i32, i32) {
    %c0_i32 = arith.constant 0 : i32
    return %arg1, %arg0 : i32, i32
  }
  func.func @transform_2(%arg0: i32, %arg1: i32, %arg2: memref<1xf32, #tpu.memory_space<smem>>) -> (i32, i32) {
    %c0_i32 = arith.constant 0 : i32
    return %arg1, %arg0 : i32, i32
  }
}

</mosaic_0001>

<bundles_post_ra>
// kernel: tpu_custom_call.1
= control target key start
LH: loop header
LB: loop body
LE: loop exit
PB: predicated region body
PF: predicated region fallthrough
CT: control target
= control target key end

     0   :  { %s98_s0 = inlined_call_operand.<no memory space> [shape: f32[1], index: 0, kind: input, shape index: {}]   ;;  %s99_s1 = inlined_call_operand.vmem [shape: f32[1,128], index: 1, kind: input, shape index: {}]   ;;  %s100_s2 = inlined_call_operand.vmem [shape: f32[2,128], index: 2, kind: input, shape index: {}]   ;;  %s101_s3 = inlined_call_operand.hbm [shape: f32[2,128], index: 3, kind: output, shape index: {}]  }
   0x1   :  { %v15_v0 = vld [vmem:[%s100_s2] sm:$0x3]  ;;  %v16_v1 = vstv %s98_s0 }
   0x2   :  { %v41_v2 = vld [vmem:[%s99_s1] ss:$0 sm:$0xff] }
   0x3   :  { %9 = vsyncpa [#allocation5], 0  ;;  %v17_v3 = vmul.f32 %v16_v1, %v15_v0  ;;  %s65_s18 = smov [#allocation4]  }
   0x4   :  { %s33_s19 = sshll.u32 %s65_s18, 4  ;;  %s34_s19 = int_to_ptr.vmem [resolvable:$true] %s33_s19 }
   0x5   :  { %v25_v4 = vadd.f32 %v41_v2, %v17_v3  ;;  %s43_s20 = scalar_lea.vmem %s34_s19, 32  ;;  %p48_p1 = scmp.lt.s32.totalorder %s34_s19, %s34_s19 }
   0x6   :  { %p44_p0 = scmp.ne.s32.totalorder %s34_s19, %s43_s20  ;;  %p49_p2 = scmp.lt.s32.totalorder %s43_s20, %s43_s20 }
   0x7   :  { %26 = vst [vmem:[#allocation4] sm:$0x3] %v25_v4 }
   0x8   :  { %p50_p3 = por %p49_p2, %p48_p1 }
   0xa   :  { %p51_p4 = pnand %p50_p3, %p44_p0 }
   0xc   :  { %54 = shalt.err (!%p51_p4)
}
   0xd   :  { %36 = dma.vmem_to_hbm [thread:$0]  %s34_s19, 32, %s101_s3, [#allocation5]  }
   0xe   :  { %63 = dma.done.wait [#allocation5], 32  }
   0xf   :  { %64 = vsyncadd [#allocation5], 4294967264 }
  0x10   :  { %40 = vsyncpa [#allocation5], 1 }

</bundles_post_ra>
